<compile_context>
chip_gen: v6e
topology: v6e:2x2x1
jax: 0.10.0
libtpu: 0.0.40
codegen_flags: <defaults>
</compile_context>

<pallas_src>
import math
from functools import partial

import numpy as np
import jax
import jax.numpy as jnp
from jax import lax
from jax.experimental import pallas as pl
from jax.experimental.pallas import tpu as pltpu


# ----------------------------- helpers -----------------------------

_VMEM_LIMIT_CACHE = None


def _vmem_limit():
    """Generation-aware VMEM budget: leave >=16 MiB headroom on v7x (64 MiB),
    allow up to ~100 MiB on v5e/v6e (128 MiB)."""
    global _VMEM_LIMIT_CACHE
    if _VMEM_LIMIT_CACHE is None:
        try:
            cap = int(pltpu.get_tpu_info().vmem_capacity_bytes)
        except Exception:
            cap = 128 * 1024 * 1024
        lim = min(cap - 16 * 1024 * 1024, 100 * 1024 * 1024)
        _VMEM_LIMIT_CACHE = max(lim, 32 * 1024 * 1024)
    return _VMEM_LIMIT_CACHE


def _compiler_params(dims):
    return pltpu.CompilerParams(
        dimension_semantics=dims,
        vmem_limit_bytes=_vmem_limit(),
    )


def _pick_tile(dim, preferred, align):
    """Largest tile <= preferred that divides `dim` and is a multiple of
    `align`; falls back to the full dim when dim <= preferred or no aligned
    divisor exists (a full-dim block is always legal)."""
    if dim <= preferred:
        return dim
    t = (preferred // align) * align
    while t >= align:
        if dim % t == 0:
            return t
        t -= align
    return dim


def _aligned_divisors(dim, align):
    divs = {dim}
    if align <= dim:
        for d in range(align, dim + 1, align):
            if dim % d == 0:
                divs.add(d)
    return sorted(divs, reverse=True)


def _fit_rows(M, align, preferred, row_bytes, fixed_bytes, budget):
    """Largest aligned divisor of M, <= preferred, whose VMEM estimate fits."""
    cands = _aligned_divisors(M, align)
    usable = [c for c in cands if c <= preferred] or [cands[-1]]
    for c in usable:
        if fixed_bytes + c * row_bytes <= budget:
            return c
    return usable[-1]


_NEG_INF = -0.7 * float(np.finfo(np.float32).max)


# ----------------------------- fused LayerNorm + matmul -----------------------------

def _ln_matmul_kernel(x_ref, g_ref, b_ref, w_ref, *rest, activation, has_bias):
    if has_bias:
        bias_ref, o_ref, h_ref = rest
    else:
        o_ref, h_ref = rest

    # LayerNorm'd tile is computed once per M block (j == 0) and cached in
    # VMEM; the N ("arbitrary") axis reuses it for every weight column block.
    @pl.when(pl.program_id(1) == 0)
    def _():
        x = x_ref[...].astype(jnp.float32)       # stats in f32 even for bf16
        mean = jnp.mean(x, axis=-1, keepdims=True)
        xc = x - mean
        var = jnp.mean(xc * xc, axis=-1, keepdims=True)
        h = xc * lax.rsqrt(var + 1e-5) * g_ref[...].astype(jnp.float32) \
            + b_ref[...].astype(jnp.float32)
        h_ref[...] = h.astype(h_ref.dtype)       # bf16 MXU input when w is bf16

    y = jnp.dot(h_ref[...], w_ref[...], preferred_element_type=jnp.float32)

    if has_bias:
        y = y + bias_ref[...].astype(jnp.float32)
    if activation == "gelu_tanh":
        c = math.sqrt(2.0 / math.pi)
        y = 0.5 * y * (1.0 + jnp.tanh(c * (y + 0.044715 * y * y * y)))
    o_ref[...] = y.astype(o_ref.dtype)


def ln_linear(x, gamma, beta, w, bias=None, activation=None, tm=None, tn=512):
    """y = (layernorm(x) @ w) [+ bias] [GELU], tiled over (M, N).

    Full-K blocks (required by the fused LN).  The LN output is cached in a
    (tm, K) VMEM scratch across the N sweep."""
    M, K = x.shape
    K2, N = w.shape
    assert K == K2
    xb = x.dtype.itemsize
    wb = w.dtype.itemsize
    align_m = 16 if xb < 4 else 8                # bf16 packs 2 rows / sublane
    tn = _pick_tile(N, tn, 128)

    if tm is None:
        budget = int(0.8 * _vmem_limit())
        row_bytes = 2 * K * xb + K * wb + 2 * tn * xb      # x(2buf) + h-cache + out(2buf)
        fixed = 2 * K * tn * wb + 2 * tn * 4 + 4 * K * 4   # w(2buf) + bias + gamma/beta
        preferred = M if M <= align_m else max(align_m, M // 2)  # keep >=2 M blocks (v7x)
        tm = _fit_rows(M, align_m, preferred, row_bytes, fixed, budget)
    else:
        tm = _pick_tile(M, tm, align_m)

    grid = (M // tm, N // tn)
    has_bias = bias is not None

    in_specs = [
        pl.BlockSpec((tm, K), lambda i, j: (i, 0)),
        pl.BlockSpec((1, K), lambda i, j: (0, 0)),
        pl.BlockSpec((1, K), lambda i, j: (0, 0)),
        pl.BlockSpec((K, tn), lambda i, j: (0, j)),
    ]
    args = [x, gamma.reshape(1, K), beta.reshape(1, K), w]
    if has_bias:
        in_specs.append(pl.BlockSpec((1, tn), lambda i, j: (0, j)))
        args.append(bias.reshape(1, N))

    kern = partial(_ln_matmul_kernel, activation=activation, has_bias=has_bias)
    return pl.pallas_call(
        kern,
        out_shape=jax.ShapeDtypeStruct((M, N), x.dtype),
        grid=grid,
        in_specs=in_specs,
        out_specs=pl.BlockSpec((tm, tn), lambda i, j: (i, j)),
        scratch_shapes=[pltpu.VMEM((tm, K), w.dtype)],      # cached LN output
        compiler_params=_compiler_params(("parallel", "arbitrary")),
    )(*args)


# ----------------------------- matmul + bias + residual -----------------------------

def _matmul_res_kernel(x_ref, w_ref, b_ref, res_ref, o_ref, acc_ref):
    k = pl.program_id(2)

    @pl.when(k == 0)
    def _():
        acc_ref[...] = jnp.zeros_like(acc_ref)

    acc_ref[...] += jnp.dot(x_ref[...], w_ref[...],
                            preferred_element_type=jnp.float32)

    @pl.when(k == pl.num_programs(2) - 1)
    def _():
        y = (acc_ref[...] + b_ref[...].astype(jnp.float32)
             + res_ref[...].astype(jnp.float32))
        o_ref[...] = y.astype(o_ref.dtype)


def linear_residual(x, w, bias, res, tm=None, tn=512, tk=1024):
    """out = res + x @ w + bias, tiled over (M, N, K) with f32 accumulation."""
    M, K = x.shape
    K2, N = w.shape
    assert K == K2 and res.shape == (M, N)
    xb = x.dtype.itemsize
    wb = w.dtype.itemsize
    align_m = 16 if xb < 4 else 8
    tn = _pick_tile(N, tn, 128)
    tk = _pick_tile(K, tk, 128)

    if tm is None:
        budget = int(0.8 * _vmem_limit())
        row_bytes = 2 * tk * xb + 4 * tn * xb + tn * 4      # x + res/out + acc
        fixed = 2 * tk * tn * wb + 2 * tn * 4               # w + bias
        preferred = M if M <= align_m else max(align_m, M // 2)
        tm = _fit_rows(M, align_m, preferred, row_bytes, fixed, budget)
    else:
        tm = _pick_tile(M, tm, align_m)

    grid = (M // tm, N // tn, K // tk)
    return pl.pallas_call(
        _matmul_res_kernel,
        out_shape=jax.ShapeDtypeStruct((M, N), x.dtype),
        grid=grid,
        in_specs=[
            pl.BlockSpec((tm, tk), lambda i, j, k: (i, k)),
            pl.BlockSpec((tk, tn), lambda i, j, k: (k, j)),
            pl.BlockSpec((1, tn), lambda i, j, k: (0, j)),
            pl.BlockSpec((tm, tn), lambda i, j, k: (i, j)),
        ],
        out_specs=pl.BlockSpec((tm, tn), lambda i, j, k: (i, j)),
        scratch_shapes=[pltpu.VMEM((tm, tn), jnp.float32)],
        compiler_params=_compiler_params(("parallel", "parallel", "arbitrary")),
    )(x, w, bias.reshape(1, N), res)


# ----------------------------- flash-style causal attention -----------------------------

def _flash_attn_kernel(q_ref, k_ref, v_ref, o_ref, m_sc, l_sc, acc_sc, *, scale):
    qi = pl.program_id(1)
    ki = pl.program_id(2)
    tq = q_ref.shape[1]
    tkv = k_ref.shape[1]

    @pl.when(ki == 0)
    def _():
        m_sc[...] = jnp.full_like(m_sc, -jnp.inf)
        l_sc[...] = jnp.zeros_like(l_sc)
        acc_sc[...] = jnp.zeros_like(acc_sc)

    first_row = qi * tq
    last_row = first_row + (tq - 1)
    first_col = ki * tkv
    last_col = first_col + (tkv - 1)
    needed = first_col <= last_row        # block has at least one valid entry
    is_full = last_col <= first_row       # block entirely below the diagonal

    def body(masked):
        q = q_ref[...] * scale            # scale on q: G*tq*Dh mults, not G*tq*tkv
        k = k_ref[...]                    # [G, tkv, Dh]
        v = v_ref[...]
        s = jnp.einsum("gqd,gkd->gqk", q, k,
                       preferred_element_type=jnp.float32)
        if masked:                        # only blocks straddling the diagonal
            row = first_row + lax.broadcasted_iota(jnp.int32, (tq, tkv), 0)
            col = first_col + lax.broadcasted_iota(jnp.int32, (tq, tkv), 1)
            s = jnp.where((col <= row)[None, :, :], s, _NEG_INF)

        m_prev = m_sc[...]
        m_new = jnp.maximum(m_prev, jnp.max(s, axis=-1, keepdims=True))
        alpha = jnp.exp(m_prev - m_new)
        p = jnp.exp(s - m_new)
        l_sc[...] = alpha * l_sc[...] + jnp.sum(p, axis=-1, keepdims=True)
        acc_sc[...] = alpha * acc_sc[...] + jnp.einsum(
            "gqk,gkd->gqd", p.astype(v.dtype), v,
            preferred_element_type=jnp.float32)
        m_sc[...] = m_new

    @pl.when(jnp.logical_and(needed, is_full))
    def _():
        body(masked=False)

    @pl.when(jnp.logical_and(needed, jnp.logical_not(is_full)))
    def _():
        body(masked=True)

    @pl.when(ki == pl.num_programs(2) - 1)
    def _():
        o_ref[...] = (acc_sc[...] / l_sc[...]).astype(o_ref.dtype)


def flash_attention(q, k, v, *, tq=256, tkv=512):
    """q, k, v: [B*H, T, Dh] -> [B*H, T, Dh], causal softmax(QK^T/sqrt(Dh)) V.

    Grid: (head-groups, q-tiles, kv-tiles); online softmax; KV blocks above the
    diagonal are skipped (compute gated, DMA clamped to an already-needed
    block), and only diagonal-straddling blocks build the causal mask."""
    BH, T, Dh = q.shape
    align = 16 if q.dtype.itemsize < 4 else 8
    tq = _pick_tile(T, tq, align)
    tkv = _pick_tile(T, tkv, align)

    # Head grouping amortizes per-step overhead, but keep >=2 groups so both
    # v7x TensorCores get work on the leading "parallel" axis.
    max_g = min(8, BH // 2) if BH >= 2 else 1
    G = 1
    for g in range(max_g, 0, -1):
        if BH % g == 0:
            G = g
            break

    grid = (BH // G, T // tq, T // tkv)
    scale = 1.0 / math.sqrt(Dh)

    q_spec = pl.BlockSpec((G, tq, Dh), lambda g, i, j: (g, i, 0))
    kv_spec = pl.BlockSpec(
        (G, tkv, Dh),
        lambda g, i, j: (g, jnp.minimum(j, (i * tq + tq - 1) // tkv), 0))
    o_spec = pl.BlockSpec((G, tq, Dh), lambda g, i, j: (g, i, 0))

    # TODO(synk): a flattened lower-triangular grid (PrefetchScalarGridSpec
    # mapping linear step -> (qi, ki)) would remove the per-step overhead of
    # the skipped above-diagonal KV steps for long T.
    return pl.pallas_call(
        partial(_flash_attn_kernel, scale=scale),
        out_shape=jax.ShapeDtypeStruct((BH, T, Dh), q.dtype),
        grid=grid,
        in_specs=[q_spec, kv_spec, kv_spec],
        out_specs=o_spec,
        scratch_shapes=[
            pltpu.VMEM((G, tq, 1), jnp.float32),     # running max
            pltpu.VMEM((G, tq, 1), jnp.float32),     # running denom
            pltpu.VMEM((G, tq, Dh), jnp.float32),    # accumulator
        ],
        compiler_params=_compiler_params(("parallel", "parallel", "arbitrary")),
    )(q, k, v)


# ----------------------------- Parameter init -----------------------------

def init_params(key, cfg):
    V, P, L, H, C = (cfg["vocab_size"], cfg["block_size"], cfg["n_layer"],
                     cfg["n_head"], cfg["n_embd"])
    std = 0.02
    std_proj = 0.02 * (2 * L) ** (-0.5)   # NANOGPT_SCALE_INIT
    keys = iter(jax.random.split(key, 4 + 6 * L))
    params = {
        "wte": jax.random.normal(next(keys), (V, C), jnp.float32) * std,
        "wpe": jax.random.normal(next(keys), (P, C), jnp.float32) * std,
        "ln_f_g": jnp.ones((C,), jnp.float32),
        "ln_f_b": jnp.zeros((C,), jnp.float32),
        "blocks": [],
    }
    for _ in range(L):
        blk = {
            "ln1_g": jnp.ones((C,), jnp.float32),
            "ln1_b": jnp.zeros((C,), jnp.float32),
            # weights stored pre-transposed as [in, out]
            "attn_w": jax.random.normal(next(keys), (C, 3 * C), jnp.float32) * std,
            "attn_b": jnp.zeros((3 * C,), jnp.float32),
            "proj_w": jax.random.normal(next(keys), (C, C), jnp.float32) * std_proj,
            "proj_b": jnp.zeros((C,), jnp.float32),
            "ln2_g": jnp.ones((C,), jnp.float32),
            "ln2_b": jnp.zeros((C,), jnp.float32),
            "fc_w": jax.random.normal(next(keys), (C, 4 * C), jnp.float32) * std,
            "fc_b": jnp.zeros((4 * C,), jnp.float32),
            "fc_proj_w": jax.random.normal(next(keys), (4 * C, C), jnp.float32) * std_proj,
            "fc_proj_b": jnp.zeros((C,), jnp.float32),
        }
        params["blocks"].append(blk)
    return params


# ----------------------------- Forward pass -----------------------------

def gpt_forward(params, idx, cfg):
    B, T = idx.shape
    C, H, V = cfg["n_embd"], cfg["n_head"], cfg["vocab_size"]
    Dh = C // H
    M = B * T

    # Embedding gathers stay in JAX.
    x = (params["wte"][idx] + params["wpe"][:T][None, :, :]).reshape(M, C)

    for blk in params["blocks"]:
        # --- causal self-attention (ln_1 fused into the qkv projection) ---
        qkv = ln_linear(x, blk["ln1_g"], blk["ln1_b"],
                        blk["attn_w"], blk["attn_b"])                  # [M, 3C]
        # TODO(synk): consume qkv directly in [B, T, 3, H, Dh] and emit the
        # attention output in [B, T, C] inside the kernel to remove these two
        # HBM transposes and make the attention store lane-dense (Dh < 128).
        qkv = qkv.reshape(B, T, 3, H, Dh).transpose(2, 0, 3, 1, 4)     # [3,B,H,T,Dh]
        q = qkv[0].reshape(B * H, T, Dh)
        k = qkv[1].reshape(B * H, T, Dh)
        v = qkv[2].reshape(B * H, T, Dh)
        y = flash_attention(q, k, v)                                   # [B*H,T,Dh]
        y = y.reshape(B, H, T, Dh).transpose(0, 2, 1, 3).reshape(M, C)
        # output projection with the residual add fused in
        x = linear_residual(y, blk["proj_w"], blk["proj_b"], x)

        # --- MLP (ln_2 + tanh-GELU fused into the fc matmul) ---
        h = ln_linear(x, blk["ln2_g"], blk["ln2_b"],
                      blk["fc_w"], blk["fc_b"], activation="gelu_tanh")  # [M, 4C]
        x = linear_residual(h, blk["fc_proj_w"], blk["fc_proj_b"], x)

    # --- final LN fused into the weight-tied lm_head. wte is transposed to
    #     [C, V] once per forward (one-time XLA transpose beats per-tile
    #     in-kernel transposes of the vocab weight). ---
    lm_w = params["wte"].T                                             # [C, V]
    logits = ln_linear(x, params["ln_f_g"], params["ln_f_b"], lm_w, bias=None)
    return logits.reshape(B, T, V)
    # TODO(synk): cross-entropy loss path (targets != None) not implemented;
    # this mirrors the targets=None branch which returns (logits, None).


# ----------------------------- Pure-JAX reference -----------------------------

def _ref_ln(x, g, b):
    m = jnp.mean(x, axis=-1, keepdims=True)
    v = jnp.mean((x - m) ** 2, axis=-1, keepdims=True)
    return (x - m) * lax.rsqrt(v + 1e-5) * g + b


def _ref_gelu(x):
    c = math.sqrt(2.0 / math.pi)
    return 0.5 * x * (1.0 + jnp.tanh(c * (x + 0.044715 * x ** 3)))


def ref_forward(params, idx, cfg):
    B, T = idx.shape
    C, H = cfg["n_embd"], cfg["n_head"]
    Dh = C // H
    x = params["wte"][idx] + params["wpe"][:T][None]
    for blk in params["blocks"]:
        h = _ref_ln(x, blk["ln1_g"], blk["ln1_b"])
        qkv = h @ blk["attn_w"] + blk["attn_b"]
        q, k, v = jnp.split(qkv, 3, axis=-1)
        q = q.reshape(B, T, H, Dh).transpose(0, 2, 1, 3)
        k = k.reshape(B, T, H, Dh).transpose(0, 2, 1, 3)
        v = v.reshape(B, T, H, Dh).transpose(0, 2, 1, 3)
        s = jnp.einsum("bhqd,bhkd->bhqk", q, k) / math.sqrt(Dh)
        mask = jnp.tril(jnp.ones((T, T), bool))
        s = jnp.where(mask[None, None], s, -jnp.inf)
        p = jax.nn.softmax(s, axis=-1)
        y = jnp.einsum("bhqk,bhkd->bhqd", p, v)
        y = y.transpose(0, 2, 1, 3).reshape(B, T, C)
        x = x + (y @ blk["proj_w"] + blk["proj_b"])
        h = _ref_ln(x, blk["ln2_g"], blk["ln2_b"])
        h = _ref_gelu(h @ blk["fc_w"] + blk["fc_b"])
        x = x + (h @ blk["fc_proj_w"] + blk["fc_proj_b"])
    x = _ref_ln(x, params["ln_f_g"], params["ln_f_b"])
    return x @ params["wte"].T


# ----------------------------- Main -----------------------------

if __name__ == "__main__":
    cfg = dict(vocab_size=256, block_size=16, n_layer=2, n_head=2, n_embd=128)
    B, T = 2, 16

    key = jax.random.PRNGKey(0)
    k_params, k_idx = jax.random.split(key)
    params = init_params(k_params, cfg)
    idx = jax.random.randint(k_idx, (B, T), 0, cfg["vocab_size"], dtype=jnp.int32)

    # f32 pass, checked against the pure-JAX reference.
    logits = jax.block_until_ready(gpt_forward(params, idx, cfg))
    ref = ref_forward(params, idx, cfg)
    assert logits.shape == (B, T, cfg["vocab_size"])
    assert np.allclose(np.asarray(logits), np.asarray(ref), rtol=2e-3, atol=2e-3), \
        "Pallas GPT forward mismatch vs JAX reference"

    # bf16 weights/activations (f32 MXU accumulation, f32 LN stats) run through
    # the same kernels: halves HBM/VMEM traffic, doubles MXU throughput on v6e/v7x.
    params_bf16 = jax.tree_util.tree_map(lambda p: p.astype(jnp.bfloat16), params)
    logits_bf16 = jax.block_until_ready(gpt_forward(params_bf16, idx, cfg))
    assert logits_bf16.shape == (B, T, cfg["vocab_size"])
    assert np.isfinite(np.asarray(logits_bf16.astype(jnp.float32))).all()

    print("KERNEL_OK")
</pallas_src>

<mosaic_0001>
module attributes {stable_mosaic.version = 11 : i64} {
  func.func @_ln_matmul_kernel(%arg0: i32, %arg1: i32, %arg2: memref<16x128xf32, #tpu.memory_space<vmem>>, %arg3: memref<1x128xf32, #tpu.memory_space<vmem>>, %arg4: memref<1x128xf32, #tpu.memory_space<vmem>>, %arg5: memref<128x384xf32, #tpu.memory_space<vmem>>, %arg6: memref<1x384xf32, #tpu.memory_space<vmem>>, %arg7: memref<16x384xf32, #tpu.memory_space<vmem>>, %arg8: memref<16x128xf32, #tpu.memory_space<vmem>>) attributes {dimension_semantics = [#tpu.dimension_semantics<parallel>, #tpu.dimension_semantics<arbitrary>], iteration_bounds = array<i64: 2, 1>, scalar_prefetch = 0 : i64, scratch_operands = 1 : i64, tpu.core_type = #tpu.core_type<tc>, window_params = [{transform_indices = @transform_0, window_bounds = array<i64: 16, 128>}, {pipeline_mode = #tpu.pipeline_mode<synchronous>, transform_indices = @transform_1, window_bounds = array<i64: 1, 128>}, {pipeline_mode = #tpu.pipeline_mode<synchronous>, transform_indices = @transform_2, window_bounds = array<i64: 1, 128>}, {transform_indices = @transform_3, window_bounds = array<i64: 128, 384>}, {transform_indices = @transform_4, window_bounds = array<i64: 1, 384>}, {transform_indices = @transform_5, window_bounds = array<i64: 16, 384>}]} {
    %c0_i32 = arith.constant 0 : i32
    %0 = arith.cmpi eq, %arg1, %c0_i32 : i32
    %1 = arith.extui %0 : i1 to i32
    %c0_i32_0 = arith.constant 0 : i32
    %2 = arith.cmpi ne, %1, %c0_i32_0 : i32
    scf.if %2 {
      %c0_8 = arith.constant 0 : index
      %c0_9 = arith.constant 0 : index
      %10 = vector.load %arg2[%c0_8, %c0_9] : memref<16x128xf32, #tpu.memory_space<vmem>>, vector<16x128xf32>
      %cst_10 = arith.constant dense<0.000000e+00> : vector<16xf32>
      %11 = vector.multi_reduction <add>, %10, %cst_10 [1] : vector<16x128xf32> to vector<16xf32>
      %12 = vector.shape_cast %11 : vector<16xf32> to vector<16x1xf32>
      %cst_11 = arith.constant 1.280000e+02 : f32
      %13 = vector.broadcast %cst_11 : f32 to vector<16x1xf32>
      %14 = arith.divf %12, %13 : vector<16x1xf32>
      %15 = vector.broadcast %14 : vector<16x1xf32> to vector<16x128xf32>
      %16 = arith.subf %10, %15 : vector<16x128xf32>
      %17 = arith.mulf %16, %16 : vector<16x128xf32>
      %cst_12 = arith.constant dense<0.000000e+00> : vector<16xf32>
      %18 = vector.multi_reduction <add>, %17, %cst_12 [1] : vector<16x128xf32> to vector<16xf32>
      %19 = vector.shape_cast %18 : vector<16xf32> to vector<16x1xf32>
      %cst_13 = arith.constant 1.280000e+02 : f32
      %20 = vector.broadcast %cst_13 : f32 to vector<16x1xf32>
      %21 = arith.divf %19, %20 : vector<16x1xf32>
      %cst_14 = arith.constant 9.99999974E-6 : f32
      %22 = vector.broadcast %cst_14 : f32 to vector<16x1xf32>
      %23 = arith.addf %21, %22 : vector<16x1xf32>
      %24 = math.rsqrt %23 : vector<16x1xf32>
      %25 = vector.broadcast %24 : vector<16x1xf32> to vector<16x128xf32>
      %26 = arith.mulf %16, %25 : vector<16x128xf32>
      %c0_15 = arith.constant 0 : index
      %c0_16 = arith.constant 0 : index
      %27 = vector.load %arg3[%c0_15, %c0_16] : memref<1x128xf32, #tpu.memory_space<vmem>>, vector<1x128xf32>
      %28 = vector.broadcast %27 : vector<1x128xf32> to vector<16x128xf32>
      %29 = arith.mulf %26, %28 : vector<16x128xf32>
      %c0_17 = arith.constant 0 : index
      %c0_18 = arith.constant 0 : index
      %30 = vector.load %arg4[%c0_17, %c0_18] : memref<1x128xf32, #tpu.memory_space<vmem>>, vector<1x128xf32>
      %31 = vector.broadcast %30 : vector<1x128xf32> to vector<16x128xf32>
      %32 = arith.addf %29, %31 : vector<16x128xf32>
      %c0_19 = arith.constant 0 : index
      %c0_20 = arith.constant 0 : index
      %33 = vector.load %arg8[%c0_19, %c0_20] : memref<16x128xf32, #tpu.memory_space<vmem>>, vector<16x128xf32>
      tpu.vector_store %arg8[%c0_19, %c0_20], %32 {strides = array<i32>} : memref<16x128xf32, #tpu.memory_space<vmem>>, vector<16x128xf32>,
    } else {
    }
    %c0 = arith.constant 0 : index
    %c0_1 = arith.constant 0 : index
    %3 = vector.load %arg8[%c0, %c0_1] : memref<16x128xf32, #tpu.memory_space<vmem>>, vector<16x128xf32>
    %c0_2 = arith.constant 0 : index
    %c0_3 = arith.constant 0 : index
    %4 = vector.load %arg5[%c0_2, %c0_3] : memref<128x384xf32, #tpu.memory_space<vmem>>, vector<128x384xf32>
    %cst = arith.constant dense<0.000000e+00> : vector<16x384xf32>
    %5 = tpu.matmul %3, %4, %cst {dimension_numbers = #tpu.dot_dimension_numbers<[1], [0], [0], [1], [0, 0, 1, 1], [], []>} : vector<16x128xf32>, vector<128x384xf32>, vector<16x384xf32> -> vector<16x384xf32>
    %c0_4 = arith.constant 0 : index
    %c0_5 = arith.constant 0 : index
    %6 = vector.load %arg6[%c0_4, %c0_5] : memref<1x384xf32, #tpu.memory_space<vmem>>, vector<1x384xf32>
    %7 = vector.broadcast %6 : vector<1x384xf32> to vector<16x384xf32>
    %8 = arith.addf %5, %7 : vector<16x384xf32>
    %c0_6 = arith.constant 0 : index
    %c0_7 = arith.constant 0 : index
    %9 = vector.load %arg7[%c0_6, %c0_7] : memref<16x384xf32, #tpu.memory_space<vmem>>, vector<16x384xf32>
    tpu.vector_store %arg7[%c0_6, %c0_7], %8 {strides = array<i32>} : memref<16x384xf32, #tpu.memory_space<vmem>>, vector<16x384xf32>,
    return
  }
  func.func @transform_0(%arg0: i32, %arg1: i32) -> (i32, i32) {
    %c0_i32 = arith.constant 0 : i32
    %c0_i32_0 = arith.constant 0 : i32
    return %arg0, %c0_i32 : i32, i32
  }
  func.func @transform_1(%arg0: i32, %arg1: i32) -> (i32, i32) {
    %c0_i32 = arith.constant 0 : i32
    %c0_i32_0 = arith.constant 0 : i32
    %c0_i32_1 = arith.constant 0 : i32
    return %c0_i32, %c0_i32_0 : i32, i32
  }
  func.func @transform_2(%arg0: i32, %arg1: i32) -> (i32, i32) {
    %c0_i32 = arith.constant 0 : i32
    %c0_i32_0 = arith.constant 0 : i32
    %c0_i32_1 = arith.constant 0 : i32
    return %c0_i32, %c0_i32_0 : i32, i32
  }
  func.func @transform_3(%arg0: i32, %arg1: i32) -> (i32, i32) {
    %c0_i32 = arith.constant 0 : i32
    %c0_i32_0 = arith.constant 0 : i32
    return %c0_i32, %arg1 : i32, i32
  }
  func.func @transform_4(%arg0: i32, %arg1: i32) -> (i32, i32) {
    %c0_i32 = arith.constant 0 : i32
    %c0_i32_0 = arith.constant 0 : i32
    return %c0_i32, %arg1 : i32, i32
  }
  func.func @transform_5(%arg0: i32, %arg1: i32) -> (i32, i32) {
    %c0_i32 = arith.constant 0 : i32
    return %arg0, %arg1 : i32, i32
  }
}

</mosaic_0001>

<bundles_post_ra>
// kernel: tpu_custom_call.1
= control target key start
LH: loop header
LB: loop body
LE: loop exit
PB: predicated region body
PF: predicated region fallthrough
CT: control target
= control target key end

     0   :  { %s1242_s0 = inlined_call_operand.hbm [shape: f32[32,128], index: 0, kind: input, shape index: {}]   ;;  %s1243_s1 = inlined_call_operand.vmem [shape: f32[1,128], index: 1, kind: input, shape index: {}]   ;;  %s1244_s2 = inlined_call_operand.vmem [shape: f32[1,128], index: 2, kind: input, shape index: {}]   ;;  %s1245_s3 = inlined_call_operand.hbm [shape: f32[128,384], index: 3, kind: input, shape index: {}]   ;;  %s1246_s4 = inlined_call_operand.vmem [shape: f32[1,384], index: 4, kind: input, shape index: {}]   ;;  %s1247_s5 = inlined_call_operand.hbm [shape: f32[32,384], index: 5, kind: output, shape index: {}]  }
   0x1   :  { %1250 = sst [smem:[#allocation13_spill]] %s1245_s3 }
   0x2   :  { %10 = vsyncpa [#allocation4], 0 }
   0x3   :  { %12 = vsyncpa [#allocation4 + $0x1], 0 }
   0x4   :  { %13 = vsyncpa [#allocation7], 0 }
   0x5   :  { %14 = vsyncpa [#allocation5], 0 }
   0x6   :  { %16 = vsyncpa [#allocation5 + $0x1], 0  ;;  %s1041_s18 = smov 0   ;;  %s1043_s19 = smov 0  }
   0x7   :  { %s1045_s20 = smov 0   ;;  %s1047_s21 = smov 0  }
   0x8   :  { %s1049_s22 = smov 0   ;;  %s1051_s23 = smov 0  }
   0x9 LB: > { %s702_s24 = sadd.s32 4294967295, %s999_s23   ;;  %s703_s25 = sadd.s32 4294967294, %s999_s23   ;;  %s999_s23 = sphi %s1051_s23, %s22_s23   ;;  %s995_s22 = sphi %s1049_s22, %s1270_s22   ;;  %s991_s21 = sphi %s1047_s21, %s1269_s21   ;;  %s987_s20 = sphi %s1045_s20, %s1268_s20   ;;  %s983_s19 = sphi %s1043_s19, %s1267_s19   ;;  %s979_s18 = sphi %s1041_s18, %s1266_s18  }
   0xa   : > { %p54_p0 = scmp.ne.s32.totalorder %s983_s19, %s979_s18  ;;  %p1075_p1 = scmp.eq.s32.totalorder %s702_s24, 0 }
   0xb   : > { %p1079_p2 = scmp.eq.s32.totalorder %s702_s24, 1  ;;  %p180_p3 = scmp.eq.s32.totalorder %s703_s25, 1 }
   0xc   : > { %p1085_p4 = por %p1075_p1, %p54_p0  ;;  %p704_p5 = scmp.ge.s32.totalorder %s999_s23, 1 }
   0xd   : > { %p1090_p6 = por %p180_p3, %p54_p0  ;;  %p187_p7 = scmp.lt.s32.totalorder %s999_s23, 3 }
   0xe   : > { %s1253_s28 = scalar_select %p1085_p4, 1, 0 }
   0xf   : > { %s1254_s29 = scalar_select %p1090_p6, 1, 0 }
  0x10   : > { %p1095_p8 = pnand %p704_p5, %p187_p7  ;;  %s1001_s6 = smov [#allocation6]  }
  0x11   : > { %s208_s7 = sshll.u32 %s1001_s6, 4  ;;  %s34_s9 = sadd.s32 1, %s995_s22  ;;  %s209_s7 = int_to_ptr.vmem [resolvable:$true] %s208_s7 }
  0x12   : > { %p785_p9 = pneg %p1095_p8  ;;  %s872_s10 = scalar_lea.vmem %s209_s7, 6144 }
  0x13   : > { %p873_p13 = scmp.ne.s32.totalorder %s209_s7, %s872_s10  ;;  %p880_p5 = scmp.lt.s32.totalorder %s209_s7, %s209_s7 }
  0x14   : > { %p1104_p11 = pnand %p785_p9, %p1075_p1  ;;  %p881_p7 = scmp.lt.s32.totalorder %s872_s10, %s872_s10 }
  0x16   : > { %p863_p12 = pneg %p1104_p11  ;;  %p882_p6 = por %p881_p7, %p880_p5 }
  0x18   : > { %p875_p0 = pnand %p873_p13, %p863_p12 }
  0x1a   : > { %p876_p3 = pneg %p875_p0 }
  0x1c   : > { %p883_p4 = pnand %p882_p6, %p876_p3 }
  0x1e   : > { %886 = shalt.err (!%p883_p4)
}
  0x1f   : > { %s1002_s11 = smov 384   ;;  %s1003_s12 = smov 24  }
  0x20   : > { %s1257_s3 = sld [smem:[#allocation13_spill]]  ;;  %p36_p6 = scmp.ge.s32.totalorder %s34_s9, 2 }
  0x21   : > { %s41_s15 = sadd.s32 1, %s987_s20  ;;  %p48_p4 = scmp.ne.s32.totalorder %s987_s20, %s983_s19 }
  0x22   : > { %p49_p9 = scmp.eq.s32.totalorder %s999_s23, 0  ;;  %s1272_s9 = smov (%p36_p6, %s34_s9), 0 }
  0x23   : > { %1258 = sst [smem:[#allocation12_spill]] %s1272_s9  ;;  %p1128_p13 = por %p1079_p2, %p48_p4 }
  0x24   : > { %p1122_p12 = por %p49_p9, %p48_p4  ;;  %s38_s24 = ssub.s32 %s995_s22, %s1272_s9 }
  0x25   : > { %p798_p0 = scmp.lt.s32.totalorder %s999_s23, 2  ;;  %s230_s25 = sand.u32 1, %s987_s20  }
  0x26   : > { %788 = dma.hbm_to_vmem [thread:$0]  (!%p1104_p11), %s1257_s3, 6144, %s209_s7, [#allocation7], %s1002_s11, %s1002_s11, %s1003_s12  }
  0x27   : > { %p39_p11 = scmp.eq.s32.totalorder %s38_s24, 0  ;;  %s708_s6 = sshll.u32 %s230_s25, 4 }
  0x28   : > { %s721_s8 = sshll.u32 %s995_s22, 8  ;;  %s234_s13 = scalar_lea.vmem [#allocation3], %s708_s6 }
  0x29   : > { %s1137_s7 = scalar_select %p39_p11, %s987_s20, %s41_s15  }
  0x2a   : > { %s240_s12 = scalar_lea.hbm %s1242_s0, %s721_s8  ;;  %s241_s14 = sshll.u32 %s234_s13, 4  ;;  %s242_s14 = int_to_ptr.vmem [resolvable:$true] %s241_s14 }
  0x2b   : > { %p1145_p2 = pnand %p798_p0, %p1122_p12  ;;  %s231_s3 = scalar_lea.sflag [#allocation4], %s230_s25 }
  0x2c   : > { %s900_s24 = scalar_lea.vmem %s242_s14, 256  ;;  %s1004_s15 = smov [#allocation3]  }
  0x2d   : > { %p889_p3 = pneg %p1145_p2  ;;  %p901_p5 = scmp.ne.s32.totalorder %s242_s14, %s900_s24 }
  0x2e   : > { %s905_s9 = sshll.u32 %s1004_s15, 4  ;;  %s906_s9 = int_to_ptr.vmem [resolvable:$false] %s905_s9 }
  0x2f   : > { %p903_p7 = pnand %p901_p5, %p889_p3  ;;  %s907_s8 = scalar_lea.vmem %s906_s9, 512 }
  0x30   : > { %p908_p4 = scmp.lt.s32.totalorder %s242_s14, %s906_s9  ;;  %p909_p9 = scmp.lt.s32.totalorder %s907_s8, %s900_s24 }
  0x31   : > { %p904_p6 = pneg %p903_p7 }
  0x32   : > { %p910_p11 = por %p909_p9, %p908_p4 }
  0x34   : > { %p911_p10 = pnand %p910_p11, %p904_p6 }
  0x36   : > { %914 = shalt.err (!%p911_p10)
}
  0x37   : > { %s1005_s16 = smov 128   ;;  %s1006_s6 = smov 8  }
  0x38   : > { %792 = dma.hbm_to_vmem [thread:$0]  (!%p1145_p2), %s240_s12, 256, %s242_s14, %s231_s3, %s1005_s16, %s1005_s16, %s1006_s6  }
  0x39   : > { %253 = sbr.rel (%p1095_p8) target bundleno = 587 (0x24b), region = 40  ;;  %s1156_s25 = sand.u32 (!%p1095_p8), 1, %s983_s19  }
  0x3a   : > { %s712_s10 = sshll.u32 (!%p1095_p8), %s1156_s25, 4  ;;  %s256_s9 = scalar_lea.sflag (!%p1095_p8), [#allocation4], %s1156_s25 }
  0x3b   : > { %s259_s11 = scalar_lea.vmem (!%p1095_p8), [#allocation3], %s712_s10  ;;  %p1262_p12 = scmp.ne.s32.totalorder (!%p1095_p8), %s1253_s28, 0 }
  0x3e   : > { %966 = dma.done.wait (%p1262_p12), %s256_s9, 256  }
  0x3f   : > { %968 = vsyncadd (%p1262_p12), %s256_s9, 4294967040 }
  0x40   : > { %970 = dma.done.wait (%p1075_p1), [#allocation7], 6144  }
  0x41   : > { %972 = vsyncadd (%p1075_p1), [#allocation7], 4294961152  ;;  %v307_v0 = vld [vmem:[%s259_s11] sm:$0xff]  ;;  %v308_v1 = vld [vmem:[%s259_s11 + $0x8] sm:$0xff]  ;;  %v1007_v56 = vmov 0.0   ;;  %s775_s14 = smul.u32 48, %s1156_s25 }
  0x42   : > { %309 = vadd.xlane.f32.xlu0 %v307_v0  ;;  %v400_v2 = vld [vmem:[#allocation6 + $0x170] sm:$0xff]  ;;  %v399_v3 = vld [vmem:[#allocation6 + $0x168] sm:$0xff]  ;;  %v397_v4 = vld [vmem:[#allocation6 + $0x158] sm:$0xff]  ;;  %483 = vmatprep.mubr.f32.mxu0 %v1007_v56  ;;  %s776_s15 = smul.u32 768, %s991_s21  ;;  %s578_s21 = scalar_lea.sflag [#allocation5], %s1156_s25 }
  0x43   : > { %419 = vmatprep.subr.mxu0 %v400_v2  ;;  %v396_v5 = vld [vmem:[#allocation6 + $0x150] sm:$0xff]  ;;  %v401_v6 = vld [vmem:[#allocation6 + $0x178] sm:$0xff]  ;;  %v394_v7 = vld [vmem:[#allocation6 + $0x140] sm:$0xff]  ;;  %s293_s27 = scalar_lea.vmem [#allocation8], %s775_s14  ;;  %s1008_s9 = smov [#allocation8]  }
  0x44   : > { %420 = vmatpush1.msra.mxu0 %v399_v3  ;;  %740 = vmatprep.subr.mxu1 %v401_v6  ;;  %v398_v8 = vld [vmem:[#allocation6 + $0x160] sm:$0xff]  ;;  %v393_v9 = vld [vmem:[#allocation6 + $0x138] sm:$0xff]  ;;  %v391_v10 = vld [vmem:[#allocation6 + $0x128] sm:$0xff]  ;;  %s594_s24 = sshll.u32 %s293_s27, 4  ;;  %s1194_s6 = scalar_lea.hbm %s1247_s5, %s776_s15  ;;  %s1189_s24 = int_to_ptr.vmem [resolvable:$true] %s594_s24 }
  0x45   : > { %421 = vmatprep.subr.mxu0 %v397_v4  ;;  %741 = vmatpush3.msra.mxu1 %v401_v6  ;;  %v390_v11 = vld [vmem:[#allocation6 + $0x120] sm:$0xff]  ;;  %v388_v20 = vld [vmem:[#allocation6 + $0x110] sm:$0xff]  ;;  %v395_v21 = vld [vmem:[#allocation6 + $0x148] sm:$0xff]  ;;  %s915_s10 = scalar_lea.vmem %s1189_s24, 768  ;;  %s919_s11 = sshll.u32 %s1008_s9, 4  ;;  %s920_s11 = int_to_ptr.vmem [resolvable:$false] %s919_s11 }
  0x46   : > { %311 = vadd.xlane.f32.xlu0 %v308_v1  ;;  %422 = vmatpush1.msra.mxu0 %v396_v5  ;;  %v387_v22 = vld [vmem:[#allocation6 + $0x108] sm:$0xff]  ;;  %v385_v23 = vld [vmem:[#allocation6 + $0xf8] sm:$0xff]  ;;  %v392_v24 = vld [vmem:[#allocation6 + $0x130] sm:$0xff]  ;;  %p916_p1 = scmp.ne.s32.totalorder %s1189_s24, %s915_s10  ;;  %s921_s3 = scalar_lea.vmem %s920_s11, 1536 }
  0x47   : > { %742 = vmatprep.subr.mxu1 %v398_v8  ;;  %423 = vmatprep.subr.mxu0 %v394_v7  ;;  %v384_v25 = vld [vmem:[#allocation6 + $0xf0] sm:$0xff]  ;;  %v382_v26 = vld [vmem:[#allocation6 + $0xe0] sm:$0xff]  ;;  %v389_v27 = vld [vmem:[#allocation6 + $0x118] sm:$0xff]  ;;  %p922_p0 = scmp.lt.s32.totalorder %s1189_s24, %s920_s11  ;;  %p923_p2 = scmp.lt.s32.totalorder %s921_s3, %s915_s10 }
  0x48   : > { %743 = vmatpush3.msra.mxu1 %v398_v8  ;;  %424 = vmatpush1.msra.mxu0 %v393_v9  ;;  %v381_v28 = vld [vmem:[#allocation6 + $0xd8] sm:$0xff]  ;;  %v379_v29 = vld [vmem:[#allocation6 + $0xc8] sm:$0xff]  ;;  %v386_v30 = vld [vmem:[#allocation6 + $0x100] sm:$0xff]  ;;  %p917_p8 = pnand %p916_p1, %p1128_p13 }
  0x49   : > { %425 = vmatprep.subr.mxu0 %v391_v10  ;;  %744 = vmatprep.subr.mxu1 %v395_v21  ;;  %v378_v31 = vld [vmem:[#allocation6 + $0xc0] sm:$0xff]  ;;  %v376_v32 = vld [vmem:[#allocation6 + $0xb0] sm:$0xff]  ;;  %v383_v33 = vld [vmem:[#allocation6 + $0xe8] sm:$0xff]  ;;  %p924_p3 = por %p923_p2, %p922_p0 }
  0x4a   : > { %426 = vmatpush1.msra.mxu0 %v390_v11  ;;  %745 = vmatpush3.msra.mxu1 %v395_v21  ;;  %v375_v34 = vld [vmem:[#allocation6 + $0xa8] sm:$0xff]  ;;  %v373_v35 = vld [vmem:[#allocation6 + $0x98] sm:$0xff]  ;;  %v380_v36 = vld [vmem:[#allocation6 + $0xd0] sm:$0xff]  ;;  %v404_v11 = vlaneseq  ;;  %p918_p10 = pneg %p917_p8 }
  0x4b   : > { %427 = vmatprep.subr.mxu0 %v388_v20  ;;  %746 = vmatprep.subr.mxu1 %v392_v24  ;;  %v372_v37 = vld [vmem:[#allocation6 + $0x90] sm:$0xff]  ;;  %v370_v38 = vld [vmem:[#allocation6 + $0x80] sm:$0xff]  ;;  %v377_v39 = vld [vmem:[#allocation6 + $0xb8] sm:$0xff] }
  0x4c   : > { %428 = vmatpush1.msra.mxu0 %v387_v22  ;;  %747 = vmatpush3.msra.mxu1 %v392_v24  ;;  %v369_v40 = vld [vmem:[#allocation6 + $0x78] sm:$0xff]  ;;  %v367_v41 = vld [vmem:[#allocation6 + $0x68] sm:$0xff]  ;;  %v374_v42 = vld [vmem:[#allocation6 + $0xa0] sm:$0xff]  ;;  %p925_p5 = pnand %p924_p3, %p918_p10 }
  0x4d   : > { %429 = vmatprep.subr.mxu0 %v385_v23  ;;  %748 = vmatprep.subr.mxu1 %v389_v27  ;;  %v366_v43 = vld [vmem:[#allocation6 + $0x60] sm:$0xff]  ;;  %v364_v44 = vld [vmem:[#allocation6 + $0x50] sm:$0xff]  ;;  %v371_v45 = vld [vmem:[#allocation6 + $0x88] sm:$0xff] }
  0x4e   : > { %430 = vmatpush1.msra.mxu0 %v384_v25  ;;  %749 = vmatpush3.msra.mxu1 %v389_v27  ;;  %v363_v46 = vld [vmem:[#allocation6 + $0x48] sm:$0xff]  ;;  %v361_v47 = vld [vmem:[#allocation6 + $0x38] sm:$0xff]  ;;  %v368_v48 = vld [vmem:[#allocation6 + $0x70] sm:$0xff] }
  0x4f   : > { %431 = vmatprep.subr.mxu0 %v382_v26  ;;  %750 = vmatprep.subr.mxu1 %v386_v30  ;;  %v360_v49 = vld [vmem:[#allocation6 + $0x30] sm:$0xff]  ;;  %v358_v50 = vld [vmem:[#allocation6 + $0x20] sm:$0xff]  ;;  %v365_v51 = vld [vmem:[#allocation6 + $0x58] sm:$0xff] }
  0x50   : > { %432 = vmatpush1.msra.mxu0 %v381_v28  ;;  %751 = vmatpush3.msra.mxu1 %v386_v30  ;;  %v357_v52 = vld [vmem:[#allocation6 + $0x18] sm:$0xff]  ;;  %v355_v53 = vld [vmem:[#allocation6 + $0x8] sm:$0xff]  ;;  %v362_v54 = vld [vmem:[#allocation6 + $0x40] sm:$0xff] }
  0x51   : > { %433 = vmatprep.subr.mxu0 %v379_v29  ;;  %752 = vmatprep.subr.mxu1 %v383_v33  ;;  %v354_v55 = vld [vmem:[#allocation6] sm:$0xff]  ;;  %v359_v57 = vld [vmem:[#allocation6 + $0x28] sm:$0xff]  ;;  %v356_v58 = vld [vmem:[#allocation6 + $0x10] sm:$0xff] }
  0x52   : > { %434 = vmatpush1.msra.mxu0 %v378_v31  ;;  %753 = vmatpush3.msra.mxu1 %v383_v33  ;;  %v714_v2 = vld [vmem:[%s1243_s1] ss:$0 sm:$0xff] }
  0x53   : > { %435 = vmatprep.subr.mxu0 %v376_v32  ;;  %754 = vmatprep.subr.mxu1 %v380_v36  ;;  %v715_v4 = vld [vmem:[%s1244_s2] ss:$0 sm:$0xff] }
  0x54   : > { %436 = vmatpush1.msra.mxu0 %v375_v34  ;;  %755 = vmatpush3.msra.mxu1 %v380_v36 }
  0x55   : > { %437 = vmatprep.subr.mxu0 %v373_v35  ;;  %756 = vmatprep.subr.mxu1 %v377_v39 }
  0x56   : > { %438 = vmatpush1.msra.mxu0 %v372_v37  ;;  %757 = vmatpush3.msra.mxu1 %v377_v39 }
  0x57   : > { %439 = vmatprep.subr.mxu0 %v370_v38  ;;  %758 = vmatprep.subr.mxu1 %v374_v42 }
  0x58   : > { %440 = vmatpush1.msra.mxu0 %v369_v40  ;;  %759 = vmatpush3.msra.mxu1 %v374_v42 }
  0x59   : > { %441 = vmatprep.subr.mxu0 %v367_v41  ;;  %760 = vmatprep.subr.mxu1 %v371_v45 }
  0x5a   : > { %442 = vmatpush1.msra.mxu0 %v366_v43  ;;  %761 = vmatpush3.msra.mxu1 %v371_v45 }
  0x5b   : > { %443 = vmatprep.subr.mxu0 %v364_v44  ;;  %762 = vmatprep.subr.mxu1 %v368_v48 }
  0x5c   : > { %444 = vmatpush1.msra.mxu0 %v363_v46  ;;  %763 = vmatpush3.msra.mxu1 %v368_v48 }
  0x5d   : > { %445 = vmatprep.subr.mxu0 %v361_v47  ;;  %764 = vmatprep.subr.mxu1 %v365_v51 }
  0x5e   : > { %446 = vmatpush1.msra.mxu0 %v360_v49  ;;  %765 = vmatpush3.msra.mxu1 %v365_v51 }
  0x5f   : > { %447 = vmatprep.subr.mxu0 %v358_v50  ;;  %766 = vmatprep.subr.mxu1 %v362_v54 }
  0x60   : > { %448 = vmatpush1.msra.mxu0 %v357_v52  ;;  %767 = vmatpush3.msra.mxu1 %v362_v54 }
  0x61   : > { %449 = vmatprep.subr.mxu0 %v355_v53  ;;  %768 = vmatprep.subr.mxu1 %v359_v57 }
  0x62   : > { %450 = vmatpush1.msra.mxu0 %v354_v55  ;;  %769 = vmatpush3.msra.mxu1 %v359_v57 }
  0x63   : > { %770 = vmatprep.subr.mxu1 %v356_v58 }
  0x64   : > { %771 = vmatpush3.msra.mxu1 %v356_v58 }
  0xcb   : > { %v310_v12 = vpop.xlane.xlu0 %309 }
  0xcc   : > { %v314_v13 = vmul.f32 0.0078125, %v310_v12  ;;  %v405_v12 = vshrl.u32 %v404_v11, 7 }
  0xce   : > { %v1168_v14 = vsub.f32 %v307_v0, %v314_v13  ;;  %v406_v13 = vsub.s32 0, %v405_v12 }
  0xcf   : > { %v312_v15 = vpop.xlane.xlu0 %311 }
  0xd0   : > { %v315_v16 = vmul.f32 0.0078125, %v312_v15  ;;  %v318_v17 = vmul.f32 %v1168_v14, %v1168_v14  ;;  %v410_v15 = vsub.s32 1, %v405_v12 }
  0xd2   : > { %v1172_v18 = vsub.f32 %v308_v1, %v315_v16  ;;  %320 = vadd.xlane.f32.xlu1 %v318_v17  ;;  %v414_v17 = vsub.s32 2, %v405_v12 }
  0xd4   : > { %v319_v19 = vmul.f32 %v1172_v18, %v1172_v18 }
  0xd6   : > { %322 = vadd.xlane.f32.xlu1 %v319_v19 }
 0x15b   : > { %v321_v59 = vpop.xlane.xlu1 %320 }
 0x15c   : > { %v324_v60 = vmul.f32 0.0078125, %v321_v59 }
 0x15e   : > { %v326_v61 = vadd.f32 1e-05, %v324_v60 }
 0x15f   : > { %v323_v62 = vpop.xlane.xlu1 %322 }
 0x160   : > { %857 = vrsqrt.f32 %v326_v61  ;;  %v325_v63 = vmul.f32 0.0078125, %v323_v62 }
 0x162   : > { %v327_v0 = vadd.f32 1e-05, %v325_v63 }
 0x164   : > { %859 = vrsqrt.f32 %v327_v0 }
 0x16d   : > { %v858_v1 = vpop.eup %857 }
 0x16e   : > { %v330_v3 = vmul.f32 %v858_v1, %v1168_v14  ;;  %v402_v14 = vld [vmem:[%s1246_s4] sm:$0x7] }
 0x16f   : > { %v407_v16 = vrot.slane %v402_v14, %v406_v13  ;;  %v415_v21 = vrot.slane %v402_v14, %v414_v17 }
 0x170   : > { %v339_v5 = vmul.f32 %v714_v2, %v330_v3 }
 0x171   : > { %v860_v6 = vpop.eup %859 }
 0x172   : > { %v348_v7 = vadd.f32 %v715_v4, %v339_v5  ;;  %v331_v8 = vmul.f32 %v860_v6, %v1172_v18  ;;  %v411_v18 = vrot.slane %v402_v14, %v410_v15 }
 0x174   : > { %484 = vmatmul.mubr.f32.vlgmr.msra.gmra.mxu0 %v348_v7  ;;  %772 = vmatprep.mubr.f32.mxu1 %v348_v7  ;;  %v340_v9 = vmul.f32 %v714_v2, %v331_v8 }
 0x175   : > { %489 = vmatprep.mubr.f32.mxu0 %v1007_v56 }
 0x176   : > { %v349_v10 = vadd.f32 %v715_v4, %v340_v9 }
 0x178   : > { %490 = vmatmul.mubr.f32.gmra.mxu0 %v349_v10  ;;  %773 = vmatmul.mubr.f32.vlgmr.msra.gmra.mxu1 %v349_v10 }
 0x234   : > { %v485_v19 = vpop.f32.mrf.mxu0 }
 0x235   : > { %v486_v20 = vadd.f32 %v485_v19, %v407_v16 }
 0x236   : > { %v487_v22 = vpop.f32.mrf.mxu0 }
 0x237   : > { %571 = vst [vmem:[%s293_s27] sm:$0xff] %v486_v20  ;;  %v488_v23 = vadd.f32 %v487_v22, %v411_v18 }
 0x238   : > { %v491_v24 = vpop.f32.mrf.mxu0  ;;  %v774_v25 = vpop.f32.mrf.mxu1 }
 0x239   : > { %572 = vst [vmem:[%s293_s27 + $0x8] sm:$0xff] %v488_v23  ;;  %v492_v26 = vadd.f32 %v491_v24, %v407_v16  ;;  %v568_v27 = vadd.f32 %v774_v25, %v415_v21 }
 0x23a   : > { %v493_v28 = vpop.f32.mrf.mxu0  ;;  %v562_v29 = vpop.f32.mrf.mxu1 }
 0x23b   : > { %574 = vst [vmem:[%s293_s27 + $0x18] sm:$0xff] %v492_v26  ;;  %576 = vst [vmem:[%s293_s27 + $0x28] sm:$0xff] %v568_v27  ;;  %v494_v30 = vadd.f32 %v493_v28, %v411_v18  ;;  %v563_v31 = vadd.f32 %v562_v29, %v415_v21 }
 0x23d   : > { %575 = vst [vmem:[%s293_s27 + $0x20] sm:$0xff] %v494_v30  ;;  %573 = vst [vmem:[%s293_s27 + $0x10] sm:$0xff] %v563_v31 }
 0x23e   : > { %928 = shalt.err (!%p925_p5)
}
 0x23f   : > { %s929_s26 = scalar_lea.hbm %s1194_s6, 768  ;;  %s933_s12 = scalar_lea.hbm %s1247_s5, 1536 }
 0x240   : > { %p930_p7 = scmp.ne.s32.totalorder %s1194_s6, %s929_s26  ;;  %p934_p9 = scmp.lt.s32.totalorder %s1194_s6, %s1247_s5 }
 0x241   : > { %p935_p11 = scmp.lt.s32.totalorder %s933_s12, %s929_s26 }
 0x242   : > { %p931_p6 = pnand %p930_p7, %p1128_p13 }
 0x243   : > { %p936_p12 = por %p935_p11, %p934_p9 }
 0x244   : > { %p932_p4 = pneg %p931_p6 }
 0x246   : > { %p937_p1 = pnand %p936_p12, %p932_p4 }
 0x248   : > { %940 = shalt.err (!%p937_p1)
}
 0x249   : > { %s1009_s27 = smov 384   ;;  %s1010_s15 = smov 24  }
 0x24a   : > { %783 = dma.vmem_to_hbm [thread:$0]  (%p1128_p13), %s1189_s24, 768, %s1194_s6, %s578_s21, %s1009_s27, %s1009_s27, %s1010_s15  }
 0x24b PF: > { %s609_s8 = sand.u32 1, %s979_s18   ;;  %p1263_p8 = scmp.ne.s32.totalorder %s1254_s29, 0 }
 0x24c   : > { %p1264_p10 = scmp.ge.s32.totalorder %s999_s23, 2  ;;  %s610_s16 = scalar_lea.sflag [#allocation5], %s609_s8 }
 0x24e   : > { %p794_p0 = pnand %p1264_p10, %p1263_p8 }
 0x250   : > { %p795_p2 = pneg %p794_p0 }
 0x252   : > { %974 = dma.done.wait (%p795_p2), %s610_s16, 768  }
 0x253   : > { %976 = vsyncadd (%p795_p2), %s610_s16, 4294966528  ;;  %s22_s23 = sadd.s32 1, %s999_s23   ;;  %s1265_s17 = sld [smem:[#allocation12_spill]] }
 0x254   : > { %p19_p3 = scmp.ge.s32.totalorder %s22_s23, 4   ;;  %s1266_s18 = smov %s983_s19 }
 0x255   : > { %s1267_s19 = smov %s987_s20  ;;  %s1268_s20 = smov %s1137_s7 }
 0x256   : > { %s1269_s21 = smov %s995_s22  ;;  %21 = sbr.rel (!%p19_p3) target bundleno = 9 (0x9), region = 97 }
 0x259   : > { %s1270_s22 = smov %s1265_s17 }
 0x25b   :  { %615 = vsyncpa [#allocation4], 1 }
 0x25c   :  { %617 = vsyncpa [#allocation4 + $0x1], 1 }
 0x25d   :  { %618 = vsyncpa [#allocation7], 1 }
 0x25e   :  { %619 = vsyncpa [#allocation5], 1 }
 0x25f   :  { %621 = vsyncpa [#allocation5 + $0x1], 1 }

</bundles_post_ra>
